<compile_context>
chip_gen: v7x
topology: tpu7x:2x2x1
jax: 0.10.0
libtpu: 0.0.40
codegen_flags: <defaults>
</compile_context>

<pallas_src>
import jax
import jax.numpy as jnp
from jax.experimental import pallas as pl
from jax.experimental.pallas import tpu as pltpu

LN_EPS = 1e-5                          # nn.LayerNorm default eps
VMEM_LIMIT_BYTES = 48 * 1024 * 1024    # above v5e/v6e scoped defaults, below v7x physical
VMEM_BUDGET_BYTES = 40 * 1024 * 1024   # what our own double-buffered tiles may use
MAX_BATCH_TILE = 512                   # cap on the batch grid tile


def _round_up(n, m):
    return ((n + m - 1) // m) * m


def _pick_tb(batch):
    """Batch tile: big enough to feed the MXU M-dim, small enough to bound VMEM."""
    for cand in (512, 256, 128):
        if batch > cand and batch % cand == 0:
            return cand
    return batch


def _pick_tk(h_pad, o_pad, max_tb=MAX_BATCH_TILE, budget=VMEM_BUDGET_BYTES):
    """Largest k-tile (w1 output-cols / w2 input-rows) that fits the VMEM budget.

    Per grid step (double-buffered): 2*H_pad*tk*2 (w1 bf16) + 2*tk*O_pad*2 (w2 bf16)
    + 2*TB*H_pad*2 (xn bf16) + 2*TB*O_pad*4 (out f32) + small bias tiles.
    """
    fixed = 2 * max_tb * h_pad * 2 + 2 * max_tb * o_pad * 4
    for cand in (1024, 512, 256, 128):
        if h_pad % cand != 0:
            continue
        weights = (2 * h_pad * cand * 2 + 2 * cand * o_pad * 2
                   + 2 * cand * 4 + 2 * o_pad * 4)
        if fixed + weights <= budget:
            return cand
    return 128  # h_pad is always a multiple of 128 by construction


# ----------------------------------------------------------------------------
# Kernel 1: LayerNorm core (once per batch; affine folded into linear1 weights)
# ----------------------------------------------------------------------------
def _ln_core_kernel(x_ref, o_ref):
    x = x_ref[...].astype(jnp.float32)
    mean = jnp.mean(x, axis=-1, keepdims=True)
    cen = x - mean
    var = jnp.mean(cen * cen, axis=-1, keepdims=True)     # two-pass variance
    o_ref[...] = (cen * jax.lax.rsqrt(var + LN_EPS)).astype(o_ref.dtype)


def layernorm_core(x_last, out_dtype):
    B, H = x_last.shape
    tb = _pick_tb(B)
    return pl.pallas_call(
        _ln_core_kernel,
        out_shape=jax.ShapeDtypeStruct((B, H), out_dtype),
        grid_spec=pltpu.PrefetchScalarGridSpec(
            num_scalar_prefetch=0,
            grid=(B // tb,),
            in_specs=[pl.BlockSpec((tb, H), lambda b: (b, 0))],
            out_specs=pl.BlockSpec((tb, H), lambda b: (b, 0)),
        ),
        compiler_params=pltpu.CompilerParams(
            dimension_semantics=("parallel",),
            vmem_limit_bytes=VMEM_LIMIT_BYTES),
    )(x_last)


# ----------------------------------------------------------------------------
# Kernel 2: all MLP heads fused, weight-streaming over the hidden dimension
# ----------------------------------------------------------------------------
def _fused_heads_kernel(xn_ref, w1_ref, b1_ref, w2_ref, b2_ref, o_ref):
    """Grid step (head h, batch tile b, k-tile k).

    xn_ref : (TB, H_pad)   LN core, bf16 (gamma/beta pre-folded into w1/b1)
    w1_ref : (H_pad, tk)   k-th column tile of folded linear1 weight, bf16, contiguous
    b1_ref : (1, tk)       k-th tile of folded linear1 bias, f32
    w2_ref : (tk, O_pad)   k-th row tile of padded linear2 weight, bf16, contiguous
    b2_ref : (1, O_pad)    padded linear2 bias, f32
    o_ref  : (TB, O_pad)   f32 output block, resident across k (used as accumulator)
    """
    # program_id / num_programs hoisted to the top level (never inside pl.when bodies).
    k = pl.program_id(2)
    is_first_k = k == 0
    is_last_k = k == pl.num_programs(2) - 1
    is_mask_head = pl.program_id(0) == 0

    # Linear1 k-tile: (TB,Hp)@(Hp,tk) on the MXU (bf16 in, f32 acc), + bias, ReLU.
    h = jnp.dot(xn_ref[...], w1_ref[...], preferred_element_type=jnp.float32)
    h = jnp.maximum(h + b1_ref[...], 0.0)
    # Linear2 partial: (TB,tk)@(tk,Op), accumulated into the resident f32 output block.
    y = jnp.dot(h.astype(w2_ref.dtype), w2_ref[...], preferred_element_type=jnp.float32)

    @pl.when(is_first_k)
    def _init():
        o_ref[...] = jnp.zeros_like(o_ref)

    o_ref[...] += y

    @pl.when(jnp.logical_and(is_last_k, is_mask_head))
    def _finalize_mask():                                   # sigmoid only for head 0
        z = o_ref[...] + b2_ref[...]
        o_ref[...] = 1.0 / (1.0 + jnp.exp(-z))

    @pl.when(jnp.logical_and(is_last_k, jnp.logical_not(is_mask_head)))
    def _finalize_plain():
        o_ref[...] = o_ref[...] + b2_ref[...]


def fused_heads(xn_pad, params):
    """Run every MLP head in one pallas_call. Returns (n_heads, B, O_pad) f32."""
    B, h_pad = xn_pad.shape
    w1, b1, w2, b2 = params["w1"], params["b1"], params["w2"], params["b2"]
    n_heads, nk, _, tk = w1.shape
    o_pad = w2.shape[-1]
    tb = _pick_tb(B)

    return pl.pallas_call(
        _fused_heads_kernel,
        out_shape=jax.ShapeDtypeStruct((n_heads, B, o_pad), jnp.float32),
        grid_spec=pltpu.PrefetchScalarGridSpec(
            num_scalar_prefetch=0,
            grid=(n_heads, B // tb, nk),
            in_specs=[
                pl.BlockSpec((tb, h_pad), lambda h, b, k: (b, 0)),                   # xn
                pl.BlockSpec((None, None, h_pad, tk), lambda h, b, k: (h, k, 0, 0)),  # w1 tile
                pl.BlockSpec((None, 1, tk), lambda h, b, k: (h, 0, k)),               # b1 tile
                pl.BlockSpec((None, None, tk, o_pad), lambda h, b, k: (h, k, 0, 0)),  # w2 tile
                pl.BlockSpec((None, 1, o_pad), lambda h, b, k: (h, 0, 0)),            # b2
            ],
            out_specs=pl.BlockSpec((None, tb, o_pad), lambda h, b, k: (h, b, 0)),
        ),
        compiler_params=pltpu.CompilerParams(
            dimension_semantics=("parallel", "parallel", "arbitrary"),
            vmem_limit_bytes=VMEM_LIMIT_BYTES),
    )(xn_pad, w1, b1, w2, b2)


# ----------------------------------------------------------------------------
# Parameter packing (fold LN affine, pad, quantize, tile-major repack)
# ----------------------------------------------------------------------------
def init_reconstructor_params(key, hidden_dim, num_feat_quantity,
                              cat_feat_cardinality, weight_dtype=jnp.bfloat16):
    """Head order: [mask, num, cat_0, ..., cat_{n-1}]."""
    n_cat = len(cat_feat_cardinality)
    out_dims = [num_feat_quantity + n_cat, num_feat_quantity] + list(cat_feat_cardinality)
    h_dim = hidden_dim
    h_pad = _round_up(h_dim, 128)                  # always keep the k-streaming path
    o_pad = _round_up(max(out_dims), 128)          # lane-dense output slab width
    tk = _pick_tk(h_pad, o_pad)
    nk = h_pad // tk

    keys = jax.random.split(key, 6 * len(out_dims))
    w1s, b1s, w2s, b2s = [], [], [], []
    ref = {"gamma": [], "beta": [], "w1": [], "b1": [], "w2": [], "b2": []}
    for i, o in enumerate(out_dims):
        kg, kb, k1, k2, k3, k4 = keys[6 * i:6 * i + 6]
        gamma = 1.0 + 0.1 * jax.random.normal(kg, (h_dim,), jnp.float32)
        beta = 0.02 * jax.random.normal(kb, (h_dim,), jnp.float32)
        w1 = 0.02 * jax.random.normal(k1, (h_dim, h_dim), jnp.float32)   # (in, out)
        b1 = 0.02 * jax.random.normal(k2, (h_dim,), jnp.float32)
        w2 = 0.02 * jax.random.normal(k3, (h_dim, o), jnp.float32)       # (in, out)
        b2 = 0.02 * jax.random.normal(k4, (o,), jnp.float32)
        ref["gamma"].append(gamma); ref["beta"].append(beta)
        ref["w1"].append(w1); ref["b1"].append(b1)
        ref["w2"].append(w2); ref["b2"].append(b2)

        # Fold the LN affine into linear1 (exact, in f32, before the bf16 cast):
        #   (core*gamma + beta) @ W1 + b1 == core @ (diag(gamma) @ W1) + (beta @ W1 + b1)
        w1_f = gamma[:, None] * w1
        b1_f = b1 + beta @ w1

        # Zero-pad to lane-friendly shapes, quantize to bf16, repack tile-major so every
        # streamed k-tile is one fully contiguous HBM DMA.
        w1_p = jnp.pad(w1_f, ((0, h_pad - h_dim), (0, h_pad - h_dim))).astype(weight_dtype)
        w1s.append(w1_p.reshape(h_pad, nk, tk).transpose(1, 0, 2))       # (nk, Hp, tk)
        b1s.append(jnp.pad(b1_f, (0, h_pad - h_dim)).reshape(1, h_pad))
        w2_p = jnp.pad(w2, ((0, h_pad - h_dim), (0, o_pad - o))).astype(weight_dtype)
        w2s.append(w2_p.reshape(nk, tk, o_pad))                          # (nk, tk, Op)
        b2s.append(jnp.pad(b2, (0, o_pad - o)).reshape(1, o_pad))

    return {
        "w1": jnp.stack(w1s),      # (n_heads, nk, H_pad, tk)  bf16, tile-major
        "b1": jnp.stack(b1s),      # (n_heads, 1, H_pad)       f32 (LN beta folded in)
        "w2": jnp.stack(w2s),      # (n_heads, nk, tk, O_pad)  bf16, tile-major
        "b2": jnp.stack(b2s),      # (n_heads, 1, O_pad)       f32
        "out_dims": tuple(out_dims),
        "hidden_dim": h_dim,
        "h_pad": h_pad,
        "o_pad": o_pad,
        "ref": ref,                # original f32 params (reference / debugging only)
    }


# ----------------------------------------------------------------------------
# Forward
# ----------------------------------------------------------------------------
def reconstructor_forward(params, x):
    """x: (B, S, H) -> (num_feat (B,Nf), cat_feat [(B,card_i)], mask (B, Nf+n_cat))."""
    h_dim, h_pad = params["hidden_dim"], params["h_pad"]
    x_last = x[:, -1, :]                                   # glue: last-token selection
    xn = layernorm_core(x_last, params["w1"].dtype)        # LN core, once, bf16
    xn_pad = jnp.pad(xn, ((0, 0), (0, h_pad - h_dim)))     # glue: lane padding
    out = fused_heads(xn_pad, params).astype(x.dtype)      # (n_heads, B, O_pad)
    out_dims = params["out_dims"]
    mask = out[0, :, :out_dims[0]]
    num_feat = out[1, :, :out_dims[1]]
    cat_feat = [out[2 + i, :, :o] for i, o in enumerate(out_dims[2:])]
    return num_feat, cat_feat, mask


def _reference_forward(params, x):
    """Pure-JAX f32 reference with the module's exact (unfolded) math."""
    ref = params["ref"]
    x_last = x[:, -1, :].astype(jnp.float32)
    mean = jnp.mean(x_last, axis=-1, keepdims=True)
    var = jnp.mean(jnp.square(x_last - mean), axis=-1, keepdims=True)
    core = (x_last - mean) * jax.lax.rsqrt(var + LN_EPS)
    outs = []
    for i in range(len(params["out_dims"])):
        xn = core * ref["gamma"][i] + ref["beta"][i]
        h = jnp.maximum(xn @ ref["w1"][i] + ref["b1"][i], 0.0)
        y = h @ ref["w2"][i] + ref["b2"][i]
        if i == 0:
            y = jax.nn.sigmoid(y)
        outs.append(y)
    return outs[1], outs[2:], outs[0]


def _check(a, b, tol=2e-2):
    assert a.shape == b.shape, (a.shape, b.shape)
    assert bool(jnp.all(jnp.isfinite(a)))
    err = float(jnp.max(jnp.abs(a.astype(jnp.float32) - b.astype(jnp.float32))))
    assert err < tol, err


if __name__ == "__main__":
    B, S, H = 2, 8, 32
    num_feat_quantity = 4
    cat_feat_cardinality = [3, 5]

    root = jax.random.PRNGKey(0)
    k_params, k_x = jax.random.split(root)

    params = init_reconstructor_params(k_params, H, num_feat_quantity,
                                       cat_feat_cardinality)
    x = jax.random.normal(k_x, (B, S, H), jnp.float32)

    num_feat, cat_feat, mask = reconstructor_forward(params, x)
    jax.block_until_ready(num_feat)
    for c in cat_feat:
        jax.block_until_ready(c)
    jax.block_until_ready(mask)

    # Shapes must match the PyTorch module.
    assert num_feat.shape == (B, num_feat_quantity)
    assert mask.shape == (B, num_feat_quantity + len(cat_feat_cardinality))
    assert [c.shape for c in cat_feat] == [(B, card) for card in cat_feat_cardinality]

    # Numerics vs a pure-JAX f32 reference of the module (bf16 weight quantization in
    # the kernel path is absorbed by the tolerance).
    ref_num, ref_cat, ref_mask = _reference_forward(params, x)
    _check(num_feat, ref_num)
    _check(mask, ref_mask)
    for c, rc in zip(cat_feat, ref_cat):
        _check(c, rc)

    print("KERNEL_OK")
</pallas_src>

<mosaic_0001>
module attributes {stable_mosaic.version = 11 : i64} {
  func.func @_ln_core_kernel(%arg0: i32, %arg1: memref<2x32xf32, #tpu.memory_space<vmem>>, %arg2: memref<2x32xbf16, #tpu.memory_space<vmem>>) attributes {dimension_semantics = [#tpu.dimension_semantics<parallel>], iteration_bounds = array<i64: 1>, scalar_prefetch = 0 : i64, scratch_operands = 0 : i64, tpu.core_type = #tpu.core_type<tc>, window_params = [{transform_indices = @transform_0, window_bounds = array<i64: 2, 32>}, {transform_indices = @transform_1, window_bounds = array<i64: 2, 32>}]} {
    %c0 = arith.constant 0 : index
    %c0_0 = arith.constant 0 : index
    %0 = vector.load %arg1[%c0, %c0_0] : memref<2x32xf32, #tpu.memory_space<vmem>>, vector<2x32xf32>
    %cst = arith.constant dense<0.000000e+00> : vector<2xf32>
    %1 = vector.multi_reduction <add>, %0, %cst [1] : vector<2x32xf32> to vector<2xf32>
    %2 = vector.shape_cast %1 : vector<2xf32> to vector<2x1xf32>
    %cst_1 = arith.constant 3.200000e+01 : f32
    %3 = vector.broadcast %cst_1 : f32 to vector<2x1xf32>
    %4 = arith.divf %2, %3 : vector<2x1xf32>
    %5 = vector.broadcast %4 : vector<2x1xf32> to vector<2x32xf32>
    %6 = arith.subf %0, %5 : vector<2x32xf32>
    %7 = arith.mulf %6, %6 : vector<2x32xf32>
    %cst_2 = arith.constant dense<0.000000e+00> : vector<2xf32>
    %8 = vector.multi_reduction <add>, %7, %cst_2 [1] : vector<2x32xf32> to vector<2xf32>
    %9 = vector.shape_cast %8 : vector<2xf32> to vector<2x1xf32>
    %cst_3 = arith.constant 3.200000e+01 : f32
    %10 = vector.broadcast %cst_3 : f32 to vector<2x1xf32>
    %11 = arith.divf %9, %10 : vector<2x1xf32>
    %cst_4 = arith.constant 9.99999974E-6 : f32
    %12 = vector.broadcast %cst_4 : f32 to vector<2x1xf32>
    %13 = arith.addf %11, %12 : vector<2x1xf32>
    %14 = math.rsqrt %13 : vector<2x1xf32>
    %15 = vector.broadcast %14 : vector<2x1xf32> to vector<2x32xf32>
    %16 = arith.mulf %6, %15 : vector<2x32xf32>
    %17 = arith.truncf %16 : vector<2x32xf32> to vector<2x32xbf16>
    %c0_5 = arith.constant 0 : index
    %c0_6 = arith.constant 0 : index
    %18 = vector.load %arg2[%c0_5, %c0_6] : memref<2x32xbf16, #tpu.memory_space<vmem>>, vector<2x32xbf16>
    tpu.vector_store %arg2[%c0_5, %c0_6], %17 {strides = array<i32>} : memref<2x32xbf16, #tpu.memory_space<vmem>>, vector<2x32xbf16>,
    return
  }
  func.func @transform_0(%arg0: i32) -> (i32, i32) {
    %c0_i32 = arith.constant 0 : i32
    %c0_i32_0 = arith.constant 0 : i32
    return %arg0, %c0_i32 : i32, i32
  }
  func.func @transform_1(%arg0: i32) -> (i32, i32) {
    %c0_i32 = arith.constant 0 : i32
    %c0_i32_0 = arith.constant 0 : i32
    return %arg0, %c0_i32 : i32, i32
  }
}

</mosaic_0001>

<bundles_post_ra>
// kernel: tpu_custom_call.1
= control target key start
LH: loop header
LB: loop body
LE: loop exit
PB: predicated region body
PF: predicated region fallthrough
CT: control target
= control target key end

     0   :  { %6 = vsyncpa [#allocation3], 0  ;;  %s143_s0 = inlined_call_operand.hbm [shape: f32[2,32], index: 0, kind: input, shape index: {}]   ;;  %s144_s1 = inlined_call_operand.hbm [shape: bf16[2,32], index: 1, kind: output, shape index: {}]  }
   0x1   :  { %7 = vsyncpa [#allocation4], 0  ;;  %s107_s6 = smov [#allocation2]   ;;  %s59_s10 = scalar_lea.hbm %s143_s0, 32 }
   0x2   :  { %s14_s7 = sshll.u32 %s107_s6, 4  ;;  %p60_p0 = scmp.ne.s32.totalorder %s143_s0, %s59_s10  ;;  %s15_s7 = int_to_ptr.vmem [resolvable:$true] %s14_s7 }
   0x3   :  { %p63_p1 = scmp.lt.u32.totalorder %s59_s10, %s143_s0 }
   0x5   :  { %p65_p2 = pnand %p63_p1, %p60_p0 }
   0x7   :  { %68 = shalt.err (!%p65_p2)
}
   0x8   :  { %s69_s15 = scalar_lea.vmem %s15_s7, 32  ;;  %p74_p4 = scmp.lt.s32.totalorder %s15_s7, %s15_s7 }
   0x9   :  { %p70_p3 = scmp.ne.s32.totalorder %s15_s7, %s69_s15  ;;  %p75_p5 = scmp.lt.s32.totalorder %s69_s15, %s69_s15 }
   0xb   :  { %p76_p6 = por %p75_p5, %p74_p4 }
   0xd   :  { %p77_p7 = pnand %p76_p6, %p70_p3 }
   0xf   :  { %80 = shalt.err (!%p77_p7)
}
  0x10   :  { %17 = dma.hbm_to_vmem [thread:$0]  %s143_s0, 32, %s15_s7, [#allocation3]  }
  0x11   :  { %103 = dma.done.wait [#allocation3], 32  }
  0x12   :  { %104 = vsyncadd [#allocation3], 4294967264  ;;  %vm22_vm0 = vcmask 254976   ;;  %v21_v0 = vld [vmem:[#allocation2] sm:$0x3]  ;;  %s108_s18 = smov [#allocation5]  }
  0x13   :  { %v23_v1 = vsel %vm22_vm0, %v21_v0, 0.0  ;;  %s46_s19 = sshll.u32 %s108_s18, 4  ;;  %vm38_vm1 = vcmask 253952   ;;  %s47_s19 = int_to_ptr.vmem [resolvable:$true] %s46_s19 }
  0x14   :  { %24 = vadd.xlane.f32.xlu0 %v23_v1  ;;  %s81_s0 = scalar_lea.vmem %s47_s19, 16  ;;  %s85_s20 = scalar_lea.vmem %s47_s19, 32 }
  0x15   :  { %p82_p8 = scmp.ne.s32.totalorder %s47_s19, %s81_s0  ;;  %p86_p9 = scmp.lt.s32.totalorder %s47_s19, %s47_s19 }
  0x16   :  { %p87_p10 = scmp.lt.s32.totalorder %s85_s20, %s81_s0 }
  0x18   :  { %p88_p11 = por %p87_p10, %p86_p9 }
  0x1a   :  { %p89_p12 = pnand %p88_p11, %p82_p8 }
  0xa1   :  { %v25_v2 = vpop.xlane.xlu0 %24 }
  0xa2   :  { %v27_v3 = vmul.f32 0.03125, %v25_v2 }
  0xa4   :  { %v28_v4 = vsub.f32 %v21_v0, %v27_v3 }
  0xa6   :  { %v29_v5 = vmul.f32 %v28_v4, %v28_v4 }
  0xa8   :  { %v30_v6 = vsel %vm22_vm0, %v29_v5, 0.0 }
  0xa9   :  { %31 = vadd.xlane.f32.xlu0 %v30_v6 }
 0x136   :  { %v32_v7 = vpop.xlane.xlu0 %31 }
 0x137   :  { %v33_v8 = vmul.f32 0.03125, %v32_v7 }
 0x139   :  { %v34_v9 = vadd.f32 1e-05, %v33_v8 }
 0x13b   :  { %57 = vrsqrt.f32 %v34_v9 }
 0x145   :  { %v58_v10 = vpop.eup %57 }
 0x146   :  { %v36_v11 = vmul.f32 %v58_v10, %v28_v4 }
 0x148   :  { %v37_v12 = vpack.c.bf16 %v36_v11, %v36_v11 }
 0x14a   :  { %39 = vst.msk [vmem:[#allocation5] sm:$0x1] %vm38_vm1, %v37_v12 }
 0x14b   :  { %92 = shalt.err (!%p89_p12)
}
 0x14c   :  { %s93_s23 = scalar_lea.hbm %s144_s1, 16 }
 0x14d   :  { %p94_p13 = scmp.ne.s32.totalorder %s144_s1, %s93_s23  ;;  %p97_p0 = scmp.lt.u32.totalorder %s93_s23, %s144_s1 }
 0x14f   :  { %p99_p1 = pnand %p97_p0, %p94_p13 }
 0x151   :  { %102 = shalt.err (!%p99_p1)
}
 0x152   :  { %49 = dma.vmem_to_hbm [thread:$0]  %s47_s19, 16, %s144_s1, [#allocation4]  }
 0x153   :  { %105 = dma.done.wait [#allocation4], 16  }
 0x154   :  { %106 = vsyncadd [#allocation4], 4294967280 }
 0x155   :  { %53 = vsyncpa [#allocation3], 1 }
 0x156   :  { %54 = vsyncpa [#allocation4], 1 }

</bundles_post_ra>
